<compile_context>
chip_gen: v6e
topology: v6e:2x2x1
jax: 0.10.0
libtpu: 0.0.40
codegen_flags: <defaults>
</compile_context>

<pallas_src>
import functools

import jax
import jax.numpy as jnp
from jax import lax
from jax.experimental import pallas as pl
from jax.experimental.pallas import tpu as pltpu

_EPS = 1e-5


# ----------------------------------------------------------------------------
# Helpers
# ----------------------------------------------------------------------------
def _round_up(x, m):
    return (x + m - 1) // m * m


def _pad_bytes(rows, cols, itemsize):
    """VMEM footprint of a (rows, cols) block after (8, 128) tile padding."""
    return _round_up(max(rows, 1), 8) * _round_up(max(cols, 1), 128) * itemsize


def _vmem_budget_bytes():
    """Generation-aware scoped-VMEM budget (leaves headroom for Mosaic scratch)."""
    cap = 64 << 20
    try:
        info = pltpu.get_tpu_info()
        cap = int(getattr(info, "vmem_capacity_bytes", cap))
    except Exception:
        pass
    if cap >= (128 << 20):
        # v5e / v6e: 128 MiB physical -> use most of it.
        return 110 << 20
    # v7x-class (64 MiB per TensorCore): leave ~12 MiB headroom.
    return max(min(cap - (12 << 20), 52 << 20), 32 << 20)


def _pick_tile(dim, max_tile):
    """Largest MXU-friendly tile <= max_tile that divides dim (else whole dim)."""
    if dim <= max_tile:
        return dim
    for t in (max_tile, 1024, 512, 256, 128):
        if t <= max_tile and dim % t == 0:
            return t
    return dim


def _bn(y, gamma_ref, beta_ref, *, relu, eps):
    """Training-mode BatchNorm1d (biased variance) on an f32 (N, D) value.

    Two-pass statistics (mean first, then centered sum of squares): numerically
    safe even when |mean| >> std, and essentially free since y is VMEM-resident.
    """
    inv_n = 1.0 / y.shape[0]
    mean = jnp.sum(y, axis=0, keepdims=True) * inv_n
    c = y - mean
    var = jnp.sum(c * c, axis=0, keepdims=True) * inv_n
    out = c * (lax.rsqrt(var + eps) * gamma_ref[...].astype(jnp.float32))
    out = out + beta_ref[...].astype(jnp.float32)
    return jnp.maximum(out, 0.0) if relu else out


# ----------------------------------------------------------------------------
# Fused 3-layer kernel (preferred path): hidden activations stay in VMEM.
# ----------------------------------------------------------------------------
def _fused_mlp_kernel(*refs, eps, n_layers_exec):
    # refs = [x, (w1, g1, b1), ..., (wL, gL, bL), o_ref, acc_ref]
    x_ref = refs[0]
    layers = [refs[1 + 3 * i: 4 + 3 * i] for i in range(n_layers_exec)]
    o_ref = refs[1 + 3 * n_layers_exec]
    acc_ref = refs[2 + 3 * n_layers_exec]

    k = pl.program_id(0)

    @pl.when(k == 0)
    def _():
        acc_ref[...] = jnp.zeros_like(acc_ref)

    # Layer 1 matmul is the only K-tiled (grid) reduction; f32 accumulation.
    acc_ref[...] += jnp.dot(x_ref[...], layers[0][0][...],
                            preferred_element_type=jnp.float32)

    @pl.when(k == pl.num_programs(0) - 1)
    def _():
        h = _bn(acc_ref[...], layers[0][1], layers[0][2], relu=True, eps=eps)
        for li in range(1, n_layers_exec):
            w_ref, g_ref, b_ref = layers[li]
            last = li == n_layers_exec - 1
            y = jnp.dot(h.astype(w_ref.dtype), w_ref[...],
                        preferred_element_type=jnp.float32)
            h = _bn(y, g_ref, b_ref, relu=not last, eps=eps)
        o_ref[...] = h.astype(o_ref.dtype)


def _fused_vmem_bytes(N, tk, layer_dims, x_isz, w_isz, out_isz):
    """Padded-block VMEM estimate for the fused kernel."""
    h_max = max(d for _, d in layer_dims)
    b = 2 * _pad_bytes(N, tk, x_isz)                      # x tiles (double buf)
    b += 2 * _pad_bytes(tk, layer_dims[0][1], w_isz)      # layer-1 weight tiles
    for din, dout in layer_dims[1:]:
        b += 2 * _pad_bytes(din, dout, w_isz)             # resident weights
    for _, dout in layer_dims:
        b += 2 * 2 * _pad_bytes(1, dout, 4)               # gamma/beta (8-row pad)
    b += 2 * _pad_bytes(N, layer_dims[-1][1], out_isz)    # output tiles
    b += _pad_bytes(N, layer_dims[0][1], 4)               # f32 accumulator
    b += 2 * _pad_bytes(N, h_max, 4)                      # live f32 intermediates
    return b


def projection_mlp_fused(x, params, num_layers, *, eps=_EPS, tile_k=512,
                         vmem_limit=None):
    N, Din = x.shape
    if num_layers == 3:
        layer_ids = (0, 1, 2)
    elif num_layers == 2:
        layer_ids = (0, 2)
    else:
        raise Exception
    ps = [params[i] for i in layer_ids]
    assert ps[0]["w_t"].shape[0] == Din
    H1 = ps[0]["w_t"].shape[1]
    Dout = ps[-1]["w_t"].shape[1]

    tk = _pick_tile(Din, tile_k)
    grid = (Din // tk,)

    args = [x, ps[0]["w_t"], ps[0]["gamma"], ps[0]["beta"]]
    in_specs = [
        pl.BlockSpec((N, tk), lambda k: (0, k)),
        pl.BlockSpec((tk, H1), lambda k: (k, 0)),
        pl.BlockSpec((1, H1), lambda k: (0, 0)),
        pl.BlockSpec((1, H1), lambda k: (0, 0)),
    ]
    for p in ps[1:]:
        din, dout = p["w_t"].shape
        args += [p["w_t"], p["gamma"], p["beta"]]
        in_specs += [
            pl.BlockSpec((din, dout), lambda k: (0, 0)),
            pl.BlockSpec((1, dout), lambda k: (0, 0)),
            pl.BlockSpec((1, dout), lambda k: (0, 0)),
        ]

    if vmem_limit is None:
        vmem_limit = _vmem_budget_bytes()

    kernel = functools.partial(_fused_mlp_kernel, eps=eps,
                               n_layers_exec=len(ps))
    return pl.pallas_call(
        kernel,
        out_shape=jax.ShapeDtypeStruct((N, Dout), x.dtype),
        grid_spec=pltpu.PrefetchScalarGridSpec(
            num_scalar_prefetch=0,
            grid=grid,
            in_specs=in_specs,
            out_specs=pl.BlockSpec((N, Dout), lambda k: (0, 0)),
            scratch_shapes=[pltpu.VMEM((N, H1), jnp.float32)],
        ),
        compiler_params=pltpu.CompilerParams(
            # Single K-reduction axis; BN over the full batch forbids N-tiling.
            dimension_semantics=("arbitrary",),
            vmem_limit_bytes=int(vmem_limit),
        ),
    )(*args)


# ----------------------------------------------------------------------------
# Per-layer fallback kernel (used when the fused working set exceeds VMEM).
# ----------------------------------------------------------------------------
def _linear_bn_kernel(x_ref, w_ref, gamma_ref, beta_ref, o_ref, acc_ref, *,
                      relu, eps):
    k = pl.program_id(1)

    @pl.when(k == 0)
    def _():
        acc_ref[...] = jnp.zeros_like(acc_ref)

    acc_ref[...] += jnp.dot(x_ref[...], w_ref[...],
                            preferred_element_type=jnp.float32)

    @pl.when(k == pl.num_programs(1) - 1)
    def _():
        o_ref[...] = _bn(acc_ref[...], gamma_ref, beta_ref,
                         relu=relu, eps=eps).astype(o_ref.dtype)


def _layer_vmem_bytes(N, tn, tk, x_isz, w_isz, out_isz):
    return (2 * _pad_bytes(N, tk, x_isz)          # x tiles
            + 2 * _pad_bytes(tk, tn, w_isz)       # weight tiles
            + 2 * 2 * _pad_bytes(1, tn, 4)        # gamma/beta
            + 2 * _pad_bytes(N, tn, out_isz)      # output tiles
            + _pad_bytes(N, tn, 4))               # f32 accumulator


def linear_bn(x, w_t, gamma, beta, *, relu, eps=_EPS, tile_n=512, tile_k=None,
              vmem_limit=None):
    """Fused Linear (bias dropped) + BatchNorm1d (+ReLU), tiled over (Dout, Din)."""
    N, Din = x.shape
    assert w_t.shape[0] == Din
    Dout = w_t.shape[1]
    isz = lambda a: jnp.dtype(a.dtype).itemsize

    budget = _vmem_budget_bytes() if vmem_limit is None else int(vmem_limit)
    tn = _pick_tile(Dout, tile_n)

    # Prefer tk = Din (single K step): x's block index becomes constant, so x is
    # DMA'd from HBM exactly once (not once per Dout tile) and the per-k
    # accumulator overhead disappears.  Shrink tk only if VMEM demands it.
    max_tk = Din if tile_k is None else min(tile_k, Din)
    cands = []
    for t in (Din, 1024, 512, 256, 128):
        if t <= max_tk and Din % t == 0 and t not in cands:
            cands.append(t)
    if not cands:
        cands = [Din]
    tk = cands[-1]
    for t in cands:
        if _layer_vmem_bytes(N, tn, t, isz(x), isz(w_t), isz(x)) <= budget:
            tk = t
            break

    grid = (Dout // tn, Din // tk)
    kernel = functools.partial(_linear_bn_kernel, relu=relu, eps=eps)
    return pl.pallas_call(
        kernel,
        out_shape=jax.ShapeDtypeStruct((N, Dout), x.dtype),
        grid_spec=pltpu.PrefetchScalarGridSpec(
            num_scalar_prefetch=0,
            grid=grid,                                    # (Dout tiles, Din tiles)
            in_specs=[
                pl.BlockSpec((N, tk), lambda j, k: (0, k)),
                pl.BlockSpec((tk, tn), lambda j, k: (k, j)),
                pl.BlockSpec((1, tn), lambda j, k: (0, j)),
                pl.BlockSpec((1, tn), lambda j, k: (0, j)),
            ],
            out_specs=pl.BlockSpec((N, tn), lambda j, k: (0, j)),
            scratch_shapes=[pltpu.VMEM((N, tn), jnp.float32)],
        ),
        compiler_params=pltpu.CompilerParams(
            dimension_semantics=("parallel", "arbitrary"),
            vmem_limit_bytes=int(budget),
        ),
    )(x, w_t, gamma, beta)


# ----------------------------------------------------------------------------
# Parameters & forward
# ----------------------------------------------------------------------------
def init_projection_mlp_params(key, in_dim, hidden_dim=256, out_dim=128,
                               dtype=jnp.float32):
    """Synthetic parameters, pre-laid-out for the kernels.

    Weights are stored already transposed as (Din, Dout); gamma/beta as (1, D).
    The Linear bias is kept only for the PyTorch-faithful reference -- the
    kernels drop it (BatchNorm's mean subtraction cancels it exactly).
    BN gamma/beta are randomized (PyTorch inits them to 1/0) so the tests
    exercise the affine parameters.
    """
    dims = [(in_dim, hidden_dim), (hidden_dim, hidden_dim), (hidden_dim, out_dim)]
    params = []
    for (din, dout) in dims:
        key, kw, kb, kg, ke = jax.random.split(key, 5)
        limit = 1.0 / float(din) ** 0.5
        w_t = jax.random.uniform(kw, (din, dout), dtype, -limit, limit)
        b = jax.random.uniform(kb, (1, dout), dtype, -limit, limit)
        gamma = 1.0 + 0.3 * jax.random.normal(kg, (1, dout), dtype)
        beta = 0.2 * jax.random.normal(ke, (1, dout), dtype)
        params.append(dict(w_t=w_t, b=b, gamma=gamma, beta=beta))
    return params


def cast_params_for_compute(params, compute_dtype):
    """Pre-cast the weight matrices ONCE (outside the forward pass) so no
    per-step f32->bf16 astype re-reads the weights from HBM.  gamma/beta stay
    f32 (the BN math runs in f32 inside the kernel anyway)."""
    return [dict(p, w_t=p["w_t"].astype(compute_dtype)) for p in params]


def projection_mlp_forward(x, params, num_layers=3, *, tile_k=512, tile_n=512):
    """x: (N, in_dim). Mirrors projection_MLP.forward (training-mode BN)."""
    N, Din = x.shape
    if num_layers == 3:
        layer_ids = (0, 1, 2)
    elif num_layers == 2:
        layer_ids = (0, 2)
    else:
        raise Exception

    budget = _vmem_budget_bytes()
    ps = [params[i] for i in layer_ids]
    layer_dims = [p["w_t"].shape for p in ps]
    isz = lambda a: jnp.dtype(a.dtype).itemsize
    tk = _pick_tile(Din, tile_k)
    fused_bytes = _fused_vmem_bytes(N, tk, layer_dims, isz(x),
                                    isz(ps[0]["w_t"]), isz(x))

    if fused_bytes <= int(budget * 0.9):
        # One pallas_call for the whole MLP: hidden activations never touch HBM.
        return projection_mlp_fused(x, params, num_layers, tile_k=tile_k,
                                    vmem_limit=budget)

    # Fallback: per-layer fused Linear+BN(+ReLU) kernels.
    out = x
    for i, p in enumerate(ps):
        out = linear_bn(out, p["w_t"], p["gamma"], p["beta"],
                        relu=(i < len(ps) - 1), tile_n=tile_n,
                        vmem_limit=budget)
    return out


def ref_forward(x, params, num_layers=3):
    """Pure-JAX reference with PyTorch semantics (includes the Linear bias)."""
    def layer(p, xin, relu):
        y = xin @ p["w_t"] + p["b"]
        mean = y.mean(0, keepdims=True)
        var = ((y - mean) ** 2).mean(0, keepdims=True)
        y = (y - mean) / jnp.sqrt(var + _EPS) * p["gamma"] + p["beta"]
        return jnp.maximum(y, 0.0) if relu else y

    x = layer(params[0], x, True)
    if num_layers == 3:
        x = layer(params[1], x, True)
    x = layer(params[2], x, False)
    return x


# ----------------------------------------------------------------------------
# Demo / correctness checks
# ----------------------------------------------------------------------------
if __name__ == "__main__":
    key = jax.random.PRNGKey(0)
    k_x, k_p, k_x2 = jax.random.split(key, 3)

    # Small, lane-dense demo shapes (feature dims multiples of 128); tile_k=128
    # makes the fused kernel exercise the multi-step K reduction (grid=(2,)).
    batch, in_dim, hidden_dim, out_dim = 32, 256, 128, 128

    x = jax.random.normal(k_x, (batch, in_dim), jnp.float32)
    params = init_projection_mlp_params(k_p, in_dim, hidden_dim, out_dim)

    # 3-layer fused path.
    fwd = jax.jit(functools.partial(projection_mlp_forward, num_layers=3,
                                    tile_k=128))
    out = jax.block_until_ready(fwd(x, params))
    ref = ref_forward(x, params, num_layers=3)
    assert out.shape == (batch, out_dim)
    assert jnp.allclose(out, ref, atol=2e-4, rtol=2e-4)

    # 2-layer path (projection_MLP.set_layers(2)).
    out2 = jax.block_until_ready(
        projection_mlp_forward(x, params, num_layers=2, tile_k=128))
    ref2 = ref_forward(x, params, num_layers=2)
    assert jnp.allclose(out2, ref2, atol=2e-4, rtol=2e-4)

    # Batch not a multiple of the sublane pack: BN statistics must exclude the
    # padded sublanes.
    x_odd = jax.random.normal(k_x2, (100, in_dim), jnp.float32)
    out_odd = jax.block_until_ready(
        projection_mlp_forward(x_odd, params, num_layers=3, tile_k=128))
    ref_odd = ref_forward(x_odd, params, num_layers=3)
    assert jnp.allclose(out_odd, ref_odd, atol=2e-4, rtol=2e-4)

    # bf16 operand path: weights pre-cast ONCE, f32 accumulation + f32 BN stats
    # inside the kernel; quantify the error against the f32 reference.
    params_bf16 = cast_params_for_compute(params, jnp.bfloat16)
    out_bf16 = jax.block_until_ready(
        projection_mlp_forward(x.astype(jnp.bfloat16), params_bf16,
                               num_layers=3, tile_k=128))
    out_bf16_f32 = out_bf16.astype(jnp.float32)
    assert bool(jnp.all(jnp.isfinite(out_bf16_f32)))
    assert float(jnp.max(jnp.abs(out_bf16_f32 - ref))) < 0.25

    # Exercise the per-layer fallback kernel as well (layer 1, multi-step K).
    y_pal = jax.block_until_ready(
        linear_bn(x, params[0]["w_t"], params[0]["gamma"], params[0]["beta"],
                  relu=True, tile_n=128, tile_k=128))
    y0 = x @ params[0]["w_t"] + params[0]["b"]
    m0 = y0.mean(0, keepdims=True)
    v0 = ((y0 - m0) ** 2).mean(0, keepdims=True)
    y_ref = jnp.maximum((y0 - m0) / jnp.sqrt(v0 + _EPS) * params[0]["gamma"]
                        + params[0]["beta"], 0.0)
    assert jnp.allclose(y_pal, y_ref, atol=2e-4, rtol=2e-4)

    print("KERNEL_OK")
</pallas_src>

<mosaic_0001>
module attributes {stable_mosaic.version = 11 : i64} {
  func.func @_fused_mlp_kernel(%arg0: i32, %arg1: memref<32x128xf32, #tpu.memory_space<vmem>>, %arg2: memref<128x128xf32, #tpu.memory_space<vmem>>, %arg3: memref<1x128xf32, #tpu.memory_space<vmem>>, %arg4: memref<1x128xf32, #tpu.memory_space<vmem>>, %arg5: memref<128x128xf32, #tpu.memory_space<vmem>>, %arg6: memref<1x128xf32, #tpu.memory_space<vmem>>, %arg7: memref<1x128xf32, #tpu.memory_space<vmem>>, %arg8: memref<128x128xf32, #tpu.memory_space<vmem>>, %arg9: memref<1x128xf32, #tpu.memory_space<vmem>>, %arg10: memref<1x128xf32, #tpu.memory_space<vmem>>, %arg11: memref<32x128xf32, #tpu.memory_space<vmem>>, %arg12: memref<32x128xf32, #tpu.memory_space<vmem>>) attributes {dimension_semantics = [#tpu.dimension_semantics<arbitrary>], iteration_bounds = array<i64: 2>, scalar_prefetch = 0 : i64, scratch_operands = 1 : i64, tpu.core_type = #tpu.core_type<tc>, window_params = [{transform_indices = @transform_0, window_bounds = array<i64: 32, 128>}, {transform_indices = @transform_1, window_bounds = array<i64: 128, 128>}, {pipeline_mode = #tpu.pipeline_mode<synchronous>, transform_indices = @transform_2, window_bounds = array<i64: 1, 128>}, {pipeline_mode = #tpu.pipeline_mode<synchronous>, transform_indices = @transform_3, window_bounds = array<i64: 1, 128>}, {pipeline_mode = #tpu.pipeline_mode<synchronous>, transform_indices = @transform_4, window_bounds = array<i64: 128, 128>}, {pipeline_mode = #tpu.pipeline_mode<synchronous>, transform_indices = @transform_5, window_bounds = array<i64: 1, 128>}, {pipeline_mode = #tpu.pipeline_mode<synchronous>, transform_indices = @transform_6, window_bounds = array<i64: 1, 128>}, {pipeline_mode = #tpu.pipeline_mode<synchronous>, transform_indices = @transform_7, window_bounds = array<i64: 128, 128>}, {pipeline_mode = #tpu.pipeline_mode<synchronous>, transform_indices = @transform_8, window_bounds = array<i64: 1, 128>}, {pipeline_mode = #tpu.pipeline_mode<synchronous>, transform_indices = @transform_9, window_bounds = array<i64: 1, 128>}, {pipeline_mode = #tpu.pipeline_mode<synchronous>, transform_indices = @transform_10, window_bounds = array<i64: 32, 128>}]} {
    %c0_i32 = arith.constant 0 : i32
    %0 = arith.cmpi eq, %arg0, %c0_i32 : i32
    %1 = arith.extui %0 : i1 to i32
    %c0_i32_0 = arith.constant 0 : i32
    %2 = arith.cmpi ne, %1, %c0_i32_0 : i32
    scf.if %2 {
      %cst_9 = arith.constant 0.000000e+00 : f32
      %12 = vector.broadcast %cst_9 : f32 to vector<32x128xf32>
      %c0_10 = arith.constant 0 : index
      %c0_11 = arith.constant 0 : index
      %13 = vector.load %arg12[%c0_10, %c0_11] : memref<32x128xf32, #tpu.memory_space<vmem>>, vector<32x128xf32>
      tpu.vector_store %arg12[%c0_10, %c0_11], %12 {strides = array<i32>} : memref<32x128xf32, #tpu.memory_space<vmem>>, vector<32x128xf32>,
    } else {
    }
    %c0 = arith.constant 0 : index
    %c0_1 = arith.constant 0 : index
    %3 = vector.load %arg12[%c0, %c0_1] : memref<32x128xf32, #tpu.memory_space<vmem>>, vector<32x128xf32>
    %c0_2 = arith.constant 0 : index
    %c0_3 = arith.constant 0 : index
    %4 = vector.load %arg1[%c0_2, %c0_3] : memref<32x128xf32, #tpu.memory_space<vmem>>, vector<32x128xf32>
    %c0_4 = arith.constant 0 : index
    %c0_5 = arith.constant 0 : index
    %5 = vector.load %arg2[%c0_4, %c0_5] : memref<128x128xf32, #tpu.memory_space<vmem>>, vector<128x128xf32>
    %cst = arith.constant dense<0.000000e+00> : vector<32x128xf32>
    %6 = tpu.matmul %4, %5, %cst {dimension_numbers = #tpu.dot_dimension_numbers<[1], [0], [0], [1], [0, 0, 1, 1], [], []>} : vector<32x128xf32>, vector<128x128xf32>, vector<32x128xf32> -> vector<32x128xf32>
    %7 = arith.addf %3, %6 : vector<32x128xf32>
    %c0_6 = arith.constant 0 : index
    %c0_7 = arith.constant 0 : index
    %8 = vector.load %arg12[%c0_6, %c0_7] : memref<32x128xf32, #tpu.memory_space<vmem>>, vector<32x128xf32>
    tpu.vector_store %arg12[%c0_6, %c0_7], %7 {strides = array<i32>} : memref<32x128xf32, #tpu.memory_space<vmem>>, vector<32x128xf32>,
    %c1_i32 = arith.constant 1 : i32
    %9 = arith.cmpi eq, %arg0, %c1_i32 : i32
    %10 = arith.extui %9 : i1 to i32
    %c0_i32_8 = arith.constant 0 : i32
    %11 = arith.cmpi ne, %10, %c0_i32_8 : i32
    scf.if %11 {
      %c0_9 = arith.constant 0 : index
      %c0_10 = arith.constant 0 : index
      %12 = vector.load %arg12[%c0_9, %c0_10] : memref<32x128xf32, #tpu.memory_space<vmem>>, vector<32x128xf32>
      %cst_11 = arith.constant dense<0.000000e+00> : vector<128xf32>
      %13 = vector.multi_reduction <add>, %12, %cst_11 [0] : vector<32x128xf32> to vector<128xf32>
      %14 = vector.shape_cast %13 : vector<128xf32> to vector<1x128xf32>
      %cst_12 = arith.constant 3.125000e-02 : f32
      %15 = vector.broadcast %cst_12 : f32 to vector<1x128xf32>
      %16 = arith.mulf %14, %15 : vector<1x128xf32>
      %17 = vector.broadcast %16 : vector<1x128xf32> to vector<32x128xf32>
      %18 = arith.subf %12, %17 : vector<32x128xf32>
      %19 = arith.mulf %18, %18 : vector<32x128xf32>
      %cst_13 = arith.constant dense<0.000000e+00> : vector<128xf32>
      %20 = vector.multi_reduction <add>, %19, %cst_13 [0] : vector<32x128xf32> to vector<128xf32>
      %21 = vector.shape_cast %20 : vector<128xf32> to vector<1x128xf32>
      %cst_14 = arith.constant 3.125000e-02 : f32
      %22 = vector.broadcast %cst_14 : f32 to vector<1x128xf32>
      %23 = arith.mulf %21, %22 : vector<1x128xf32>
      %cst_15 = arith.constant 9.99999974E-6 : f32
      %24 = vector.broadcast %cst_15 : f32 to vector<1x128xf32>
      %25 = arith.addf %23, %24 : vector<1x128xf32>
      %26 = math.rsqrt %25 : vector<1x128xf32>
      %c0_16 = arith.constant 0 : index
      %c0_17 = arith.constant 0 : index
      %27 = vector.load %arg3[%c0_16, %c0_17] : memref<1x128xf32, #tpu.memory_space<vmem>>, vector<1x128xf32>
      %28 = arith.mulf %26, %27 : vector<1x128xf32>
      %29 = vector.broadcast %28 : vector<1x128xf32> to vector<32x128xf32>
      %30 = arith.mulf %18, %29 : vector<32x128xf32>
      %c0_18 = arith.constant 0 : index
      %c0_19 = arith.constant 0 : index
      %31 = vector.load %arg4[%c0_18, %c0_19] : memref<1x128xf32, #tpu.memory_space<vmem>>, vector<1x128xf32>
      %32 = vector.broadcast %31 : vector<1x128xf32> to vector<32x128xf32>
      %33 = arith.addf %30, %32 : vector<32x128xf32>
      %cst_20 = arith.constant 0.000000e+00 : f32
      %34 = vector.broadcast %cst_20 : f32 to vector<32x128xf32>
      %35 = arith.maximumf %33, %34 : vector<32x128xf32>
      %c0_21 = arith.constant 0 : index
      %c0_22 = arith.constant 0 : index
      %36 = vector.load %arg5[%c0_21, %c0_22] : memref<128x128xf32, #tpu.memory_space<vmem>>, vector<128x128xf32>
      %cst_23 = arith.constant dense<0.000000e+00> : vector<32x128xf32>
      %37 = tpu.matmul %35, %36, %cst_23 {dimension_numbers = #tpu.dot_dimension_numbers<[1], [0], [0], [1], [0, 0, 1, 1], [], []>} : vector<32x128xf32>, vector<128x128xf32>, vector<32x128xf32> -> vector<32x128xf32>
      %cst_24 = arith.constant dense<0.000000e+00> : vector<128xf32>
      %38 = vector.multi_reduction <add>, %37, %cst_24 [0] : vector<32x128xf32> to vector<128xf32>
      %39 = vector.shape_cast %38 : vector<128xf32> to vector<1x128xf32>
      %cst_25 = arith.constant 3.125000e-02 : f32
      %40 = vector.broadcast %cst_25 : f32 to vector<1x128xf32>
      %41 = arith.mulf %39, %40 : vector<1x128xf32>
      %42 = vector.broadcast %41 : vector<1x128xf32> to vector<32x128xf32>
      %43 = arith.subf %37, %42 : vector<32x128xf32>
      %44 = arith.mulf %43, %43 : vector<32x128xf32>
      %cst_26 = arith.constant dense<0.000000e+00> : vector<128xf32>
      %45 = vector.multi_reduction <add>, %44, %cst_26 [0] : vector<32x128xf32> to vector<128xf32>
      %46 = vector.shape_cast %45 : vector<128xf32> to vector<1x128xf32>
      %cst_27 = arith.constant 3.125000e-02 : f32
      %47 = vector.broadcast %cst_27 : f32 to vector<1x128xf32>
      %48 = arith.mulf %46, %47 : vector<1x128xf32>
      %cst_28 = arith.constant 9.99999974E-6 : f32
      %49 = vector.broadcast %cst_28 : f32 to vector<1x128xf32>
      %50 = arith.addf %48, %49 : vector<1x128xf32>
      %51 = math.rsqrt %50 : vector<1x128xf32>
      %c0_29 = arith.constant 0 : index
      %c0_30 = arith.constant 0 : index
      %52 = vector.load %arg6[%c0_29, %c0_30] : memref<1x128xf32, #tpu.memory_space<vmem>>, vector<1x128xf32>
      %53 = arith.mulf %51, %52 : vector<1x128xf32>
      %54 = vector.broadcast %53 : vector<1x128xf32> to vector<32x128xf32>
      %55 = arith.mulf %43, %54 : vector<32x128xf32>
      %c0_31 = arith.constant 0 : index
      %c0_32 = arith.constant 0 : index
      %56 = vector.load %arg7[%c0_31, %c0_32] : memref<1x128xf32, #tpu.memory_space<vmem>>, vector<1x128xf32>
      %57 = vector.broadcast %56 : vector<1x128xf32> to vector<32x128xf32>
      %58 = arith.addf %55, %57 : vector<32x128xf32>
      %cst_33 = arith.constant 0.000000e+00 : f32
      %59 = vector.broadcast %cst_33 : f32 to vector<32x128xf32>
      %60 = arith.maximumf %58, %59 : vector<32x128xf32>
      %c0_34 = arith.constant 0 : index
      %c0_35 = arith.constant 0 : index
      %61 = vector.load %arg8[%c0_34, %c0_35] : memref<128x128xf32, #tpu.memory_space<vmem>>, vector<128x128xf32>
      %cst_36 = arith.constant dense<0.000000e+00> : vector<32x128xf32>
      %62 = tpu.matmul %60, %61, %cst_36 {dimension_numbers = #tpu.dot_dimension_numbers<[1], [0], [0], [1], [0, 0, 1, 1], [], []>} : vector<32x128xf32>, vector<128x128xf32>, vector<32x128xf32> -> vector<32x128xf32>
      %cst_37 = arith.constant dense<0.000000e+00> : vector<128xf32>
      %63 = vector.multi_reduction <add>, %62, %cst_37 [0] : vector<32x128xf32> to vector<128xf32>
      %64 = vector.shape_cast %63 : vector<128xf32> to vector<1x128xf32>
      %cst_38 = arith.constant 3.125000e-02 : f32
      %65 = vector.broadcast %cst_38 : f32 to vector<1x128xf32>
      %66 = arith.mulf %64, %65 : vector<1x128xf32>
      %67 = vector.broadcast %66 : vector<1x128xf32> to vector<32x128xf32>
      %68 = arith.subf %62, %67 : vector<32x128xf32>
      %69 = arith.mulf %68, %68 : vector<32x128xf32>
      %cst_39 = arith.constant dense<0.000000e+00> : vector<128xf32>
      %70 = vector.multi_reduction <add>, %69, %cst_39 [0] : vector<32x128xf32> to vector<128xf32>
      %71 = vector.shape_cast %70 : vector<128xf32> to vector<1x128xf32>
      %cst_40 = arith.constant 3.125000e-02 : f32
      %72 = vector.broadcast %cst_40 : f32 to vector<1x128xf32>
      %73 = arith.mulf %71, %72 : vector<1x128xf32>
      %cst_41 = arith.constant 9.99999974E-6 : f32
      %74 = vector.broadcast %cst_41 : f32 to vector<1x128xf32>
      %75 = arith.addf %73, %74 : vector<1x128xf32>
      %76 = math.rsqrt %75 : vector<1x128xf32>
      %c0_42 = arith.constant 0 : index
      %c0_43 = arith.constant 0 : index
      %77 = vector.load %arg9[%c0_42, %c0_43] : memref<1x128xf32, #tpu.memory_space<vmem>>, vector<1x128xf32>
      %78 = arith.mulf %76, %77 : vector<1x128xf32>
      %79 = vector.broadcast %78 : vector<1x128xf32> to vector<32x128xf32>
      %80 = arith.mulf %68, %79 : vector<32x128xf32>
      %c0_44 = arith.constant 0 : index
      %c0_45 = arith.constant 0 : index
      %81 = vector.load %arg10[%c0_44, %c0_45] : memref<1x128xf32, #tpu.memory_space<vmem>>, vector<1x128xf32>
      %82 = vector.broadcast %81 : vector<1x128xf32> to vector<32x128xf32>
      %83 = arith.addf %80, %82 : vector<32x128xf32>
      %c0_46 = arith.constant 0 : index
      %c0_47 = arith.constant 0 : index
      %84 = vector.load %arg11[%c0_46, %c0_47] : memref<32x128xf32, #tpu.memory_space<vmem>>, vector<32x128xf32>
      tpu.vector_store %arg11[%c0_46, %c0_47], %83 {strides = array<i32>} : memref<32x128xf32, #tpu.memory_space<vmem>>, vector<32x128xf32>,
    } else {
    }
    return
  }
  func.func @transform_0(%arg0: i32) -> (i32, i32) {
    %c0_i32 = arith.constant 0 : i32
    %c0_i32_0 = arith.constant 0 : i32
    return %c0_i32, %arg0 : i32, i32
  }
  func.func @transform_1(%arg0: i32) -> (i32, i32) {
    %c0_i32 = arith.constant 0 : i32
    %c0_i32_0 = arith.constant 0 : i32
    return %arg0, %c0_i32 : i32, i32
  }
  func.func @transform_2(%arg0: i32) -> (i32, i32) {
    %c0_i32 = arith.constant 0 : i32
    %c0_i32_0 = arith.constant 0 : i32
    %c0_i32_1 = arith.constant 0 : i32
    return %c0_i32, %c0_i32_0 : i32, i32
  }
  func.func @transform_3(%arg0: i32) -> (i32, i32) {
    %c0_i32 = arith.constant 0 : i32
    %c0_i32_0 = arith.constant 0 : i32
    %c0_i32_1 = arith.constant 0 : i32
    return %c0_i32, %c0_i32_0 : i32, i32
  }
  func.func @transform_4(%arg0: i32) -> (i32, i32) {
    %c0_i32 = arith.constant 0 : i32
    %c0_i32_0 = arith.constant 0 : i32
    %c0_i32_1 = arith.constant 0 : i32
    return %c0_i32, %c0_i32_0 : i32, i32
  }
  func.func @transform_5(%arg0: i32) -> (i32, i32) {
    %c0_i32 = arith.constant 0 : i32
    %c0_i32_0 = arith.constant 0 : i32
    %c0_i32_1 = arith.constant 0 : i32
    return %c0_i32, %c0_i32_0 : i32, i32
  }
  func.func @transform_6(%arg0: i32) -> (i32, i32) {
    %c0_i32 = arith.constant 0 : i32
    %c0_i32_0 = arith.constant 0 : i32
    %c0_i32_1 = arith.constant 0 : i32
    return %c0_i32, %c0_i32_0 : i32, i32
  }
  func.func @transform_7(%arg0: i32) -> (i32, i32) {
    %c0_i32 = arith.constant 0 : i32
    %c0_i32_0 = arith.constant 0 : i32
    %c0_i32_1 = arith.constant 0 : i32
    return %c0_i32, %c0_i32_0 : i32, i32
  }
  func.func @transform_8(%arg0: i32) -> (i32, i32) {
    %c0_i32 = arith.constant 0 : i32
    %c0_i32_0 = arith.constant 0 : i32
    %c0_i32_1 = arith.constant 0 : i32
    return %c0_i32, %c0_i32_0 : i32, i32
  }
  func.func @transform_9(%arg0: i32) -> (i32, i32) {
    %c0_i32 = arith.constant 0 : i32
    %c0_i32_0 = arith.constant 0 : i32
    %c0_i32_1 = arith.constant 0 : i32
    return %c0_i32, %c0_i32_0 : i32, i32
  }
  func.func @transform_10(%arg0: i32) -> (i32, i32) {
    %c0_i32 = arith.constant 0 : i32
    %c0_i32_0 = arith.constant 0 : i32
    %c0_i32_1 = arith.constant 0 : i32
    return %c0_i32, %c0_i32_0 : i32, i32
  }
}

</mosaic_0001>

<bundles_post_ra>
// kernel: projection_mlp_forward.1
= control target key start
LH: loop header
LB: loop body
LE: loop exit
PB: predicated region body
PF: predicated region fallthrough
CT: control target
= control target key end

     0   :  { %s1928_s0 = inlined_call_operand.hbm [shape: f32[32,256], index: 0, kind: input, shape index: {}]   ;;  %s1929_s1 = inlined_call_operand.hbm [shape: f32[256,128], index: 1, kind: input, shape index: {}]   ;;  %s1930_s2 = inlined_call_operand.vmem [shape: f32[1,128], index: 2, kind: input, shape index: {}]   ;;  %s1931_s3 = inlined_call_operand.hbm [shape: f32[1,128], index: 3, kind: input, shape index: {}]   ;;  %s1932_s4 = inlined_call_operand.hbm [shape: f32[128,128], index: 4, kind: input, shape index: {}]   ;;  %s1933_s5 = inlined_call_operand.vmem [shape: f32[1,128], index: 5, kind: input, shape index: {}]   ;;  %s1934_s6 = inlined_call_operand.vmem [shape: f32[1,128], index: 6, kind: input, shape index: {}]   ;;  %s1935_s7 = inlined_call_operand.hbm [shape: f32[128,128], index: 7, kind: input, shape index: {}]   ;;  %s1936_s8 = inlined_call_operand.vmem [shape: f32[1,128], index: 8, kind: input, shape index: {}]   ;;  %s1937_s9 = inlined_call_operand.vmem [shape: f32[1,128], index: 9, kind: input, shape index: {}]   ;;  %s1938_s10 = inlined_call_operand.hbm [shape: f32[32,128], index: 10, kind: output, shape index: {}]  }
   0x1   :  { %1944 = sst [smem:[#allocation20_spill]] %s1928_s0 }
   0x2   :  { %1945 = sst [smem:[#allocation21_spill]] %s1931_s3 }
   0x3   :  { %1946 = sst [smem:[#allocation22_spill]] %s1932_s4 }
   0x4   :  { %1947 = sst [smem:[#allocation23_spill]] %s1935_s7 }
   0x5   :  { %15 = vsyncpa [#allocation4], 0 }
   0x6   :  { %17 = vsyncpa [#allocation4 + $0x1], 0 }
   0x7   :  { %18 = vsyncpa [#allocation7], 0 }
   0x8   :  { %20 = vsyncpa [#allocation7 + $0x1], 0 }
   0x9   :  { %21 = vsyncpa [#allocation10], 0 }
   0xa   :  { %22 = vsyncpa [#allocation5], 0  ;;  %s1661_s13 = smov 0   ;;  %s1663_s14 = smov 0  }
   0xb   :  { %s1665_s15 = smov 0   ;;  %s1667_s16 = smov 0  }
   0xc LB: > { %1948 = sst [smem:[#allocation18_spill]] %s1588_s15  ;;  %s1680_s17 = sadd.s32 4294967295, %s1592_s16   ;;  %s1592_s16 = sphi %s1667_s16, %s1971_s16   ;;  %s1588_s15 = sphi %s1665_s15, %s1968_s15   ;;  %s1584_s14 = sphi %s1663_s14, %s1970_s14   ;;  %s1580_s13 = sphi %s1661_s13, %s1969_s13  }
   0xd   : > { %s1683_s18 = sadd.s32 1, %s1592_s16   ;;  %s35_s20 = sadd.s32 1, %s1588_s15 }
   0xe   : > { %s32_s19 = ssub.s32 %s1592_s16, %s1683_s18  ;;  %p42_p1 = scmp.ne.s32.totalorder %s1588_s15, %s1584_s14 }
   0xf   : > { %p33_p0 = scmp.eq.s32.totalorder %s32_s19, 0  ;;  %p43_p2 = scmp.eq.s32.totalorder %s1592_s16, 0 }
  0x10   : > { %p48_p3 = scmp.ne.s32.totalorder %s1584_s14, %s1580_s13  ;;  %p1939_p5 = scmp.eq.s32.totalorder %s1680_s17, 0 }
  0x11   : > { %s1693_s21 = scalar_select %p33_p0, %s1588_s15, %s35_s20  }
  0x12   : > { %p1695_p4 = por %p43_p2, %p42_p1  ;;  %p1058_p6 = scmp.ge.s32.totalorder %s1592_s16, 1 }
  0x13   : > { %1949 = sst [smem:[#allocation19_spill]] %s1693_s21  ;;  %p274_p7 = scmp.lt.s32.totalorder %s1592_s16, 3 }
  0x14   : > { %p1704_p8 = por %p1939_p5, %p48_p3  ;;  %s1594_s25 = smov [#allocation8]  }
  0x15   : > { %p1709_p10 = pnand %p1058_p6, %p274_p7  ;;  %s290_s26 = sshll.u32 %s1594_s25, 4  ;;  %s291_s26 = int_to_ptr.vmem [resolvable:$true] %s290_s26 }
  0x16   : > { %s1951_s23 = scalar_select %p1704_p8, 1, 0 }
  0x17   : > { %s1952_s24 = scalar_select %p1709_p10, 1, 0 }
  0x18   : > { %p1310_p11 = pneg %p1709_p10  ;;  %p1330_p12 = scmp.lt.s32.totalorder %s1592_s16, 2 }
  0x19   : > { %s1595_s28 = smov [#allocation9]   ;;  %s1395_s11 = scalar_lea.vmem %s291_s26, 16 }
  0x1a   : > { %p1718_p13 = pnand %p1310_p11, %p1939_p5  ;;  %s300_s29 = sshll.u32 %s1595_s28, 4  ;;  %s301_s29 = int_to_ptr.vmem [resolvable:$true] %s300_s29 }
  0x1b   : > { %p1724_p0 = pnand %p1330_p12, %p1695_p4  ;;  %p1396_p2 = scmp.ne.s32.totalorder %s291_s26, %s1395_s11 }
  0x1c   : > { %p1386_p1 = pneg %p1718_p13  ;;  %s1402_s12 = scalar_lea.vmem %s291_s26, 32 }
  0x1d   : > { %s1954_s30 = scalar_select %p1724_p0, 1, 0 }
  0x1e   : > { %p1398_p3 = pnand %p1396_p2, %p1386_p1  ;;  %p1403_p7 = scmp.lt.s32.totalorder %s291_s26, %s291_s26 }
  0x1f   : > { %p1404_p11 = scmp.lt.s32.totalorder %s1402_s12, %s1395_s11 }
  0x20   : > { %p1399_p6 = pneg %p1398_p3 }
  0x21   : > { %p1405_p9 = por %p1404_p11, %p1403_p7 }
  0x23   : > { %p1406_p5 = pnand %p1405_p9, %p1399_p6 }
  0x25   : > { %1409 = shalt.err (!%p1406_p5)
}
  0x26   : > { %s1955_s3 = sld [smem:[#allocation21_spill]]  ;;  %s1421_s20 = scalar_lea.vmem %s301_s29, 2048 }
  0x27   : > { %p1422_p4 = scmp.ne.s32.totalorder %s301_s29, %s1421_s20  ;;  %p1429_p3 = scmp.lt.s32.totalorder %s301_s29, %s301_s29 }
  0x28   : > { %p1430_p8 = scmp.lt.s32.totalorder %s1421_s20, %s1421_s20 }
  0x29   : > { %p1424_p12 = pnand %p1422_p4, %p1386_p1 }
  0x2a   : > { %p1431_p10 = por %p1430_p8, %p1429_p3 }
  0x2b   : > { %p1425_p2 = pneg %p1424_p12 }
  0x2c   : > { %1313 = dma.hbm_to_vmem [thread:$0]  (!%p1718_p13), %s1955_s3, 16, %s291_s26, [#allocation7]  }
  0x2d   : > { %p1432_p0 = pnand %p1431_p10, %p1425_p2 }
  0x2f   : > { %1435 = shalt.err (!%p1432_p0)
}
  0x30   : > { %s1596_s22 = smov 128   ;;  %s1597_s25 = smov 8  }
  0x31   : > { %s1956_s4 = sld [smem:[#allocation22_spill]]  ;;  %s1750_s11 = sand.u32 1, %s1588_s15  }
  0x32   : > { %s1598_s12 = smov [#allocation11]   ;;  %s1063_s19 = sshll.u32 %s1750_s11, 5 }
  0x33   : > { %s319_s13 = sshll.u32 %s1598_s12, 4  ;;  %s320_s13 = int_to_ptr.vmem [resolvable:$true] %s319_s13 }
  0x34   : > { %s1447_s20 = scalar_lea.vmem %s320_s13, 2048  ;;  %p1455_p10 = scmp.lt.s32.totalorder %s320_s13, %s320_s13 }
  0x35   : > { %p1448_p5 = scmp.ne.s32.totalorder %s320_s13, %s1447_s20  ;;  %p1456_p0 = scmp.lt.s32.totalorder %s1447_s20, %s1447_s20 }
  0x37   : > { %1316 = dma.hbm_to_vmem [thread:$0]  (!%p1718_p13), %s1956_s4, 2048, %s301_s29, [#allocation10], %s1596_s22, %s1596_s22, %s1597_s25  }
  0x38   : > { %p1450_p8 = pnand %p1448_p5, %p1386_p1  ;;  %p1457_p6 = por %p1456_p0, %p1455_p10 }
  0x3a   : > { %p1451_p9 = pneg %p1450_p8 }
  0x3c   : > { %p1458_p7 = pnand %p1457_p6, %p1451_p9 }
  0x3e   : > { %1461 = shalt.err (!%p1458_p7)
}
  0x3f   : > { %s1957_s7 = sld [smem:[#allocation23_spill]]  ;;  %s1064_s28 = sshll.u32 %s1592_s16, 7 }
  0x40   : > { %s1958_s0 = sld [smem:[#allocation20_spill]]  ;;  %s343_s27 = scalar_lea.vmem [#allocation3], %s1063_s19 }
  0x41   : > { %s349_s4 = sshll.u32 %s343_s27, 4  ;;  %s340_s21 = scalar_lea.sflag [#allocation4], %s1750_s11  ;;  %s1770_s4 = int_to_ptr.vmem [resolvable:$true] %s349_s4 }
  0x42   : > { %p1959_p11 = scmp.ne.s32.totalorder %s1954_s30, 0 }
  0x44   : > { %p1464_p4 = pneg %p1959_p11 }
  0x45   : > { %1319 = dma.hbm_to_vmem [thread:$0]  (!%p1718_p13), %s1957_s7, 2048, %s320_s13, [#allocation10], %s1596_s22, %s1596_s22, %s1597_s25  }
  0x46   : > { %s1768_s20 = scalar_lea.hbm %s1958_s0, %s1064_s28  ;;  %s1467_s26 = scalar_lea.hbm %s1958_s0, 1024 }
  0x47   : > { %s1462_s29 = scalar_lea.hbm %s1768_s20, 512  ;;  %p1468_p2 = scmp.lt.s32.totalorder %s1768_s20, %s1958_s0 }
  0x48   : > { %p1463_p1 = scmp.ne.s32.totalorder %s1768_s20, %s1462_s29  ;;  %p1469_p3 = scmp.lt.s32.totalorder %s1467_s26, %s1462_s29 }
  0x4a   : > { %p1465_p13 = pnand %p1464_p4, %p1463_p1  ;;  %p1470_p5 = por %p1469_p3, %p1468_p2 }
  0x4c   : > { %p1466_p12 = pneg %p1465_p13 }
  0x4e   : > { %p1471_p8 = pnand %p1470_p5, %p1466_p12 }
  0x50   : > { %1474 = shalt.err (!%p1471_p8)
}
  0x51   : > { %s1475_s19 = scalar_lea.vmem %s1770_s4, 512  ;;  %s1599_s27 = smov [#allocation3]  }
  0x52   : > { %p1476_p9 = scmp.ne.s32.totalorder %s1770_s4, %s1475_s19  ;;  %s1480_s13 = sshll.u32 %s1599_s27, 4  ;;  %s1481_s13 = int_to_ptr.vmem [resolvable:$false] %s1480_s13 }
  0x53   : > { %s1482_s3 = scalar_lea.vmem %s1481_s13, 1024  ;;  %p1483_p6 = scmp.lt.s32.totalorder %s1770_s4, %s1481_s13 }
  0x54   : > { %p1478_p10 = pnand %p1476_p9, %p1464_p4  ;;  %p1484_p7 = scmp.lt.s32.totalorder %s1482_s3, %s1475_s19 }
  0x56   : > { %p1479_p0 = pneg %p1478_p10  ;;  %p1485_p1 = por %p1484_p7, %p1483_p6 }
  0x58   : > { %p1486_p13 = pnand %p1485_p1, %p1479_p0 }
  0x5a   : > { %1489 = shalt.err (!%p1486_p13)
}
  0x5b   : > { %s1600_s29 = smov 256   ;;  %s359_s26 = sand.u32 1, %s1592_s16  }
  0x5c   : > { %1323 = dma.hbm_to_vmem [thread:$0]  (!%p1959_p11), %s1768_s20, 512, %s1770_s4, %s340_s21, %s1600_s29, %s1596_s22, %s1597_s25  }
  0x5d   : > { %s1065_s28 = sshll.u32 %s1750_s11, 7  ;;  %s1083_s12 = sshll.u32 %s1592_s16, 11 }
  0x5e   : > { %s363_s19 = scalar_lea.vmem [#allocation6], %s1065_s28  ;;  %s1807_s0 = scalar_lea.hbm %s1929_s1, %s1083_s12 }
  0x5f   : > { %s370_s27 = sshll.u32 %s363_s19, 4  ;;  %s360_s7 = scalar_lea.sflag [#allocation7], %s359_s26  ;;  %s1809_s27 = int_to_ptr.vmem [resolvable:$true] %s370_s27 }
  0x60   : > { %s1490_s15 = scalar_lea.hbm %s1807_s0, 2048  ;;  %s1495_s21 = scalar_lea.hbm %s1929_s1, 4096 }
  0x61   : > { %p1491_p12 = scmp.ne.s32.totalorder %s1807_s0, %s1490_s15  ;;  %p1496_p5 = scmp.lt.s32.totalorder %s1807_s0, %s1929_s1 }
  0x62   : > { %p1497_p8 = scmp.lt.s32.totalorder %s1495_s21, %s1490_s15 }
  0x63   : > { %p1493_p2 = pnand %p1491_p12, %p1464_p4 }
  0x64   : > { %p1498_p9 = por %p1497_p8, %p1496_p5 }
  0x65   : > { %p1494_p3 = pneg %p1493_p2 }
  0x67   : > { %p1499_p10 = pnand %p1498_p9, %p1494_p3 }
  0x69   : > { %1502 = shalt.err (!%p1499_p10)
}
  0x6a   : > { %s1503_s29 = scalar_lea.vmem %s1809_s27, 2048  ;;  %s1601_s26 = smov [#allocation6]  }
  0x6b   : > { %p1504_p0 = scmp.ne.s32.totalorder %s1809_s27, %s1503_s29  ;;  %s1508_s28 = sshll.u32 %s1601_s26, 4  ;;  %s1509_s28 = int_to_ptr.vmem [resolvable:$false] %s1508_s28 }
  0x6c   : > { %s1510_s12 = scalar_lea.vmem %s1509_s28, 4096  ;;  %p1511_p1 = scmp.lt.s32.totalorder %s1809_s27, %s1509_s28 }
  0x6d   : > { %p1506_p6 = pnand %p1504_p0, %p1464_p4  ;;  %p1512_p13 = scmp.lt.s32.totalorder %s1510_s12, %s1503_s29 }
  0x6f   : > { %p1507_p7 = pneg %p1506_p6  ;;  %p1513_p12 = por %p1512_p13, %p1511_p1 }
  0x71   : > { %p1514_p2 = pnand %p1513_p12, %p1507_p7 }
  0x73   : > { %1517 = shalt.err (!%p1514_p2)
}
  0x74   : > { %1326 = dma.hbm_to_vmem [thread:$0]  (!%p1959_p11), %s1807_s0, 2048, %s1809_s27, %s360_s7, %s1596_s22, %s1596_s22, %s1597_s25  }
  0x75   : > { %p1960_p4 = scmp.ne.s32.totalorder %s1952_s24, 0 }
  0x76   : > { %s384_s15 = sand.u32 (!%p1960_p4), 1, %s1584_s14   ;;  %p1961_p3 = scmp.ne.s32.totalorder (!%p1960_p4), %s1951_s23, 0 }
  0x77   : > { %382 = sbr.rel (%p1960_p4) target bundleno = 1006 (0x3ee), region = 60  ;;  %s1069_s19 = sshll.u32 (!%p1960_p4), %s384_s15, 5 }
  0x78   : > { %s385_s13 = scalar_lea.sflag (!%p1960_p4), [#allocation4], %s384_s15  ;;  %s1839_s3 = scalar_lea.vmem (!%p1960_p4), [#allocation3], %s1069_s19 }
  0x7c   : > { %1559 = dma.done.wait (%p1961_p3), %s385_s13, 512  }
  0x7d   : > { %1561 = vsyncadd (%p1961_p3), %s385_s13, 4294966784  ;;  %s393_s30 = sand.u32 1, %s1680_s17   ;;  %s1070_s4 = sshll.u32 %s384_s15, 7 }
  0x7e   : > { %s394_s0 = scalar_lea.sflag [#allocation7], %s393_s30  ;;  %s1846_s7 = scalar_lea.vmem [#allocation6], %s1070_s4 }
  0x7f   : > { %1563 = dma.done.wait (%p1961_p3), %s394_s0, 2048  }
  0x80   : > { %1565 = vsyncadd (%p1961_p3), %s394_s0, 4294965248  ;;  %p1962_p11 = scmp.eq.s32.totalorder %s1680_s17, 0 }
  0x82   : > { %1567 = dma.done.wait (%p1962_p11), [#allocation7], 16   ;;  %p1963_p5 = pmov %p1962_p11 }
  0x84   : > { %1569 = vsyncadd (%p1963_p5), [#allocation7], 4294967280  ;;  %p1964_p8 = pmov %p1963_p5 }
  0x85   : > { %p1965_p9 = pmov %p1963_p5 }
  0x86   : > { %1571 = dma.done.wait (%p1964_p8), [#allocation10], 4096  }
  0x87   : > { %1573 = vsyncadd (%p1965_p9), [#allocation10], 4294963200  ;;  %p1966_p10 = scmp.ne.s32.totalorder %s1680_s17, 0 }
  0x89   : > { %450 = sbr.rel (%p1966_p10) target bundleno = 145 (0x91), region = 84 }
  0x8e   : > { %v1602_v0 = vmov 0.0  }
  0x8f   : > { %451 = vst [vmem:[#allocation2 + $0x10] sm:$0xff] %v1602_v0  ;;  %452 = vst [vmem:[#allocation2] sm:$0xff] %v1602_v0 }
  0x90   : > { %453 = vst [vmem:[#allocation2 + $0x18] sm:$0xff] %v1602_v0  ;;  %454 = vst [vmem:[#allocation2 + $0x8] sm:$0xff] %v1602_v0 }
  0x91 PF: > { %v478_v1 = vld [vmem:[%s1846_s7 + $0x78] sm:$0xff]  ;;  %v477_v2 = vld [vmem:[%s1846_s7 + $0x70] sm:$0xff]  ;;  %v476_v3 = vld [vmem:[%s1846_s7 + $0x68] sm:$0xff]  ;;  %p1075_p0 = scmp.ne.s32.totalorder %s1680_s17, 1 }
  0x92   : > { %1144 = vmatprep.subr.mxu0 %v478_v1  ;;  %1258 = vmatprep.subr.mxu1 %v478_v1  ;;  %v475_v4 = vld [vmem:[%s1846_s7 + $0x60] sm:$0xff]  ;;  %v474_v5 = vld [vmem:[%s1846_s7 + $0x58] sm:$0xff]  ;;  %v473_v6 = vld [vmem:[%s1846_s7 + $0x50] sm:$0xff] }
  0x93   : > { %1145 = vmatpush3.msra.mxu0 %v478_v1  ;;  %1274 = vmatpush3.msra.mxu1 %v478_v1  ;;  %v472_v7 = vld [vmem:[%s1846_s7 + $0x48] sm:$0xff]  ;;  %v471_v8 = vld [vmem:[%s1846_s7 + $0x40] sm:$0xff]  ;;  %v470_v9 = vld [vmem:[%s1846_s7 + $0x38] sm:$0xff] }
  0x94   : > { %1146 = vmatprep.subr.mxu0 %v477_v2  ;;  %1259 = vmatprep.subr.mxu1 %v477_v2  ;;  %v469_v10 = vld [vmem:[%s1846_s7 + $0x30] sm:$0xff]  ;;  %v468_v11 = vld [vmem:[%s1846_s7 + $0x28] sm:$0xff]  ;;  %v467_v12 = vld [vmem:[%s1846_s7 + $0x20] sm:$0xff] }
  0x95   : > { %1147 = vmatpush3.msra.mxu0 %v477_v2  ;;  %1275 = vmatpush3.msra.mxu1 %v477_v2  ;;  %v466_v13 = vld [vmem:[%s1846_s7 + $0x18] sm:$0xff]  ;;  %v465_v14 = vld [vmem:[%s1846_s7 + $0x10] sm:$0xff]  ;;  %v464_v15 = vld [vmem:[%s1846_s7 + $0x8] sm:$0xff] }
  0x96   : > { %1148 = vmatprep.subr.mxu0 %v476_v3  ;;  %1260 = vmatprep.subr.mxu1 %v476_v3  ;;  %v463_v16 = vld [vmem:[%s1846_s7] sm:$0xff]  ;;  %v461_v18 = vld [vmem:[%s1839_s3 + $0x10] sm:$0xff]  ;;  %v460_v19 = vld [vmem:[%s1839_s3 + $0x8] sm:$0xff] }
  0x97   : > { %1149 = vmatpush3.msra.mxu0 %v476_v3  ;;  %1276 = vmatpush3.msra.mxu1 %v476_v3  ;;  %v459_v17 = vld [vmem:[%s1839_s3] sm:$0xff]  ;;  %v462_v20 = vld [vmem:[%s1839_s3 + $0x18] sm:$0xff]  ;;  %v458_v22 = vld [vmem:[#allocation2 + $0x8] sm:$0xff] }
  0x98   : > { %1150 = vmatprep.subr.mxu0 %v475_v4  ;;  %1261 = vmatprep.subr.mxu1 %v475_v4  ;;  %v456_v21 = vld [vmem:[#allocation2] sm:$0xff]  ;;  %v455_v25 = vld [vmem:[#allocation2 + $0x10] sm:$0xff]  ;;  %v457_v26 = vld [vmem:[#allocation2 + $0x18] sm:$0xff] }
  0x99   : > { %1151 = vmatpush3.msra.mxu0 %v475_v4  ;;  %1277 = vmatpush3.msra.mxu1 %v475_v4 }
  0x9a   : > { %1152 = vmatprep.subr.mxu0 %v474_v5  ;;  %1262 = vmatprep.subr.mxu1 %v474_v5 }
  0x9b   : > { %1153 = vmatpush3.msra.mxu0 %v474_v5  ;;  %1278 = vmatpush3.msra.mxu1 %v474_v5 }
  0x9c   : > { %1154 = vmatprep.subr.mxu0 %v473_v6  ;;  %1263 = vmatprep.subr.mxu1 %v473_v6 }
  0x9d   : > { %1155 = vmatpush3.msra.mxu0 %v473_v6  ;;  %1279 = vmatpush3.msra.mxu1 %v473_v6 }
  0x9e   : > { %1156 = vmatprep.subr.mxu0 %v472_v7  ;;  %1264 = vmatprep.subr.mxu1 %v472_v7 }
  0x9f   : > { %1157 = vmatpush3.msra.mxu0 %v472_v7  ;;  %1280 = vmatpush3.msra.mxu1 %v472_v7 }
  0xa0   : > { %1158 = vmatprep.subr.mxu0 %v471_v8  ;;  %1265 = vmatprep.subr.mxu1 %v471_v8 }
  0xa1   : > { %1159 = vmatpush3.msra.mxu0 %v471_v8  ;;  %1281 = vmatpush3.msra.mxu1 %v471_v8 }
  0xa2   : > { %1160 = vmatprep.subr.mxu0 %v470_v9  ;;  %1266 = vmatprep.subr.mxu1 %v470_v9 }
  0xa3   : > { %1161 = vmatpush3.msra.mxu0 %v470_v9  ;;  %1282 = vmatpush3.msra.mxu1 %v470_v9 }
  0xa4   : > { %1162 = vmatprep.subr.mxu0 %v469_v10  ;;  %1267 = vmatprep.subr.mxu1 %v469_v10 }
  0xa5   : > { %1163 = vmatpush3.msra.mxu0 %v469_v10  ;;  %1283 = vmatpush3.msra.mxu1 %v469_v10 }
  0xa6   : > { %1164 = vmatprep.subr.mxu0 %v468_v11  ;;  %1268 = vmatprep.subr.mxu1 %v468_v11 }
  0xa7   : > { %1165 = vmatpush3.msra.mxu0 %v468_v11  ;;  %1284 = vmatpush3.msra.mxu1 %v468_v11 }
  0xa8   : > { %1166 = vmatprep.subr.mxu0 %v467_v12  ;;  %1269 = vmatprep.subr.mxu1 %v467_v12 }
  0xa9   : > { %1167 = vmatpush3.msra.mxu0 %v467_v12  ;;  %1285 = vmatpush3.msra.mxu1 %v467_v12 }
  0xaa   : > { %1168 = vmatprep.subr.mxu0 %v466_v13  ;;  %1270 = vmatprep.subr.mxu1 %v466_v13 }
  0xab   : > { %1169 = vmatpush3.msra.mxu0 %v466_v13  ;;  %1286 = vmatpush3.msra.mxu1 %v466_v13 }
  0xac   : > { %1170 = vmatprep.subr.mxu0 %v465_v14  ;;  %1271 = vmatprep.subr.mxu1 %v465_v14 }
  0xad   : > { %1171 = vmatpush3.msra.mxu0 %v465_v14  ;;  %1287 = vmatpush3.msra.mxu1 %v465_v14 }
  0xae   : > { %1172 = vmatprep.subr.mxu0 %v464_v15  ;;  %1272 = vmatprep.subr.mxu1 %v464_v15 }
  0xaf   : > { %1173 = vmatpush3.msra.mxu0 %v464_v15  ;;  %1288 = vmatpush3.msra.mxu1 %v464_v15 }
  0xb0   : > { %1174 = vmatprep.subr.mxu0 %v463_v16  ;;  %1273 = vmatprep.subr.mxu1 %v463_v16 }
  0xb1   : > { %1175 = vmatpush3.msra.mxu0 %v463_v16  ;;  %1289 = vmatpush3.msra.mxu1 %v463_v16 }
  0xb2   : > { %1176 = vmatprep.mubr.f32.mxu0 %v459_v17  ;;  %1179 = vmatprep.mubr.f32.mxu1 %v461_v18 }
  0xb3   : > { %1177 = vmatmul.mubr.f32.vlgmr.msra.gmra.mxu0 %v460_v19  ;;  %1180 = vmatmul.mubr.f32.vlgmr.msra.gmra.mxu1 %v462_v20 }
 0x173   : > { %v1178_v23 = vpop.f32.mrf.mxu0  ;;  %v1181_v24 = vpop.f32.mrf.mxu1 }
 0x174   : > { %v565_v27 = vadd.f32 %v1178_v23, %v456_v21  ;;  %v567_v28 = vadd.f32 %v1181_v24, %v458_v22  ;;  %575 = sbr.rel (%p1075_p0) target bundleno = 990 (0x3de), region = 88 }
 0x175   : > { %v545_v29 = vpop.f32.mrf.mxu0  ;;  %v555_v30 = vpop.f32.mrf.mxu1 }
 0x176   : > { %569 = vst [vmem:[#allocation2] sm:$0xff] %v565_v27  ;;  %571 = vst [vmem:[#allocation2 + $0x8] sm:$0xff] %v567_v28  ;;  %v564_v31 = vadd.f32 %v545_v29, %v455_v25  ;;  %v566_v32 = vadd.f32 %v555_v30, %v457_v26 }
 0x178   : > { %568 = vst [vmem:[#allocation2 + $0x10] sm:$0xff] %v564_v31  ;;  %570 = vst [vmem:[#allocation2 + $0x18] sm:$0xff] %v566_v32 }
 0x179   : > { %v650_v33 = vld [vmem:[#allocation9 + $0x78] sm:$0xff]  ;;  %v649_v34 = vld [vmem:[#allocation9 + $0x70] sm:$0xff]  ;;  %v648_v35 = vld [vmem:[#allocation9 + $0x68] sm:$0xff]  ;;  %v612_v18 = vlaneseq }
 0x17a   : > { %1182 = vmatprep.subr.mxu0 %v650_v33  ;;  %v647_v36 = vld [vmem:[#allocation9 + $0x60] sm:$0xff]  ;;  %v646_v39 = vld [vmem:[#allocation9 + $0x58] sm:$0xff]  ;;  %v645_v43 = vld [vmem:[#allocation9 + $0x50] sm:$0xff] }
 0x17b   : > { %1183 = vmatpush3.msra.mxu0 %v650_v33  ;;  %v644_v45 = vld [vmem:[#allocation9 + $0x48] sm:$0xff]  ;;  %v643_v47 = vld [vmem:[#allocation9 + $0x40] sm:$0xff]  ;;  %v642_v49 = vld [vmem:[#allocation9 + $0x38] sm:$0xff]  ;;  %v613_v19 = vshrl.u32 %v612_v18, 7 }
 0x17c   : > { %1184 = vmatprep.subr.mxu0 %v649_v34  ;;  %v641_v51 = vld [vmem:[#allocation9 + $0x30] sm:$0xff]  ;;  %v640_v53 = vld [vmem:[#allocation9 + $0x28] sm:$0xff]  ;;  %v639_v55 = vld [vmem:[#allocation9 + $0x20] sm:$0xff] }
 0x17d   : > { %1185 = vmatpush3.msra.mxu0 %v649_v34  ;;  %v577_v38 = vld [vmem:[#allocation2] sm:$0xff]  ;;  %v579_v42 = vld [vmem:[#allocation2 + $0x8] sm:$0xff]  ;;  %v637_v59 = vld [vmem:[#allocation9 + $0x10] sm:$0xff]  ;;  %v1886_v21 = vsub.s32 0, %v613_v19 }
 0x17e   : > { %1186 = vmatprep.subr.mxu0 %v648_v35  ;;  %v638_v57 = vld [vmem:[#allocation9 + $0x18] sm:$0xff]  ;;  %v636_v61 = vld [vmem:[#allocation9 + $0x8] sm:$0xff]  ;;  %v635_v2 = vld [vmem:[#allocation9] sm:$0xff] }
 0x17f   : > { %v576_v37 = vld [vmem:[#allocation2 + $0x10] sm:$0xff]  ;;  %1187 = vmatpush3.msra.mxu0 %v648_v35  ;;  %v578_v40 = vld [vmem:[#allocation2 + $0x18] sm:$0xff]  ;;  %v610_v20 = vld [vmem:[%s1930_s2] sm:$0x1] }
 0x180   : > { %v580_v41 = vadd.f32 %v577_v38, %v576_v37  ;;  %1188 = vmatprep.subr.mxu0 %v647_v36  ;;  %v1076_v25 = vld [vmem:[#allocation8] ss:$0 sm:$0xff] }
 0x181   : > { %1189 = vmatpush3.msra.mxu0 %v647_v36 }
 0x182   : > { %v581_v44 = vadd.f32 %v580_v41, %v578_v40  ;;  %1190 = vmatprep.subr.mxu0 %v646_v39  ;;  %v803_v41 = vld [vmem:[#allocation11 + $0x60] sm:$0xff] }
 0x183   : > { %1191 = vmatpush3.msra.mxu0 %v646_v39  ;;  %v805_v39 = vld [vmem:[#allocation11 + $0x70] sm:$0xff] }
 0x184   : > { %v582_v46 = vadd.f32 %v581_v44, %v579_v42  ;;  %1192 = vmatprep.subr.mxu0 %v645_v43  ;;  %v800_v44 = vld [vmem:[#allocation11 + $0x48] sm:$0xff] }
 0x185   : > { %1193 = vmatpush3.msra.mxu0 %v645_v43  ;;  %v801_v43 = vld [vmem:[#allocation11 + $0x50] sm:$0xff] }
 0x186   : > { %v583_v48 = vrot.slane %v582_v46, 4  ;;  %1194 = vmatprep.subr.mxu0 %v644_v45 }
 0x187   : > { %1195 = vmatpush3.msra.mxu0 %v644_v45  ;;  %v799_v45 = vld [vmem:[#allocation11 + $0x40] sm:$0xff] }
 0x188   : > { %v584_v50 = vadd.f32 %v583_v48, %v582_v46  ;;  %1196 = vmatprep.subr.mxu0 %v643_v47  ;;  %v798_v46 = vld [vmem:[#allocation11 + $0x38] sm:$0xff]  ;;  %v796_v48 = vld [vmem:[#allocation11 + $0x28] sm:$0xff] }
 0x189   : > { %1197 = vmatpush3.msra.mxu0 %v643_v47  ;;  %v797_v47 = vld [vmem:[#allocation11 + $0x30] sm:$0xff] }
 0x18a   : > { %v585_v52 = vrot.slane %v584_v50, 2  ;;  %1198 = vmatprep.subr.mxu0 %v642_v49 }
 0x18b   : > { %1199 = vmatpush3.msra.mxu0 %v642_v49  ;;  %v795_v49 = vld [vmem:[#allocation11 + $0x20] sm:$0xff] }
 0x18c   : > { %v586_v54 = vadd.f32 %v585_v52, %v584_v50  ;;  %1200 = vmatprep.subr.mxu0 %v641_v51  ;;  %v794_v50 = vld [vmem:[#allocation11 + $0x18] sm:$0xff]  ;;  %v792_v52 = vld [vmem:[#allocation11 + $0x8] sm:$0xff] }
 0x18d   : > { %1201 = vmatpush3.msra.mxu0 %v641_v51  ;;  %v793_v51 = vld [vmem:[#allocation11 + $0x10] sm:$0xff] }
 0x18e   : > { %v587_v56 = vrot.slane %v586_v54, 1  ;;  %1202 = vmatprep.subr.mxu0 %v640_v53 }
 0x18f   : > { %1203 = vmatpush3.msra.mxu0 %v640_v53  ;;  %v791_v53 = vld [vmem:[#allocation11] sm:$0xff] }
 0x190   : > { %v588_v58 = vadd.f32 %v587_v56, %v586_v54  ;;  %1204 = vmatprep.subr.mxu0 %v639_v55 }
 0x191   : > { %1205 = vmatpush3.msra.mxu0 %v639_v55 }
 0x192   : > { %v589_v60 = vmul.f32 0.03125, %v588_v58  ;;  %1206 = vmatprep.subr.mxu0 %v638_v57 }
 0x193   : > { %1207 = vmatpush3.msra.mxu0 %v638_v57 }
 0x194   : > { %v590_v62 = vsub.f32 %v576_v37, %v589_v60  ;;  %v591_v63 = vsub.f32 %v577_v38, %v589_v60  ;;  %v592_v0 = vsub.f32 %v578_v40, %v589_v60  ;;  %v593_v1 = vsub.f32 %v579_v42, %v589_v60  ;;  %1208 = vmatprep.subr.mxu0 %v637_v59  ;;  %v806_v38 = vld [vmem:[#allocation11 + $0x78] sm:$0xff]  ;;  %v804_v40 = vld [vmem:[#allocation11 + $0x68] sm:$0xff] }
 0x195   : > { %1209 = vmatpush3.msra.mxu0 %v637_v59  ;;  %1220 = vmatprep.subr.mxu1 %v806_v38  ;;  %v802_v42 = vld [vmem:[#allocation11 + $0x58] sm:$0xff] }
 0x196   : > { %v594_v3 = vmul.f32 %v590_v62, %v590_v62  ;;  %v595_v4 = vmul.f32 %v591_v63, %v591_v63  ;;  %v596_v5 = vmul.f32 %v592_v0, %v592_v0  ;;  %1210 = vmatprep.subr.mxu0 %v636_v61  ;;  %v597_v6 = vmul.f32 %v593_v1, %v593_v1 }
 0x197   : > { %1211 = vmatpush3.msra.mxu0 %v636_v61  ;;  %1221 = vmatpush3.msra.mxu1 %v806_v38 }
 0x198   : > { %v598_v7 = vadd.f32 %v595_v4, %v594_v3  ;;  %1212 = vmatprep.subr.mxu0 %v635_v2  ;;  %1222 = vmatprep.subr.mxu1 %v805_v39 }
 0x199   : > { %1213 = vmatpush3.msra.mxu0 %v635_v2  ;;  %1223 = vmatpush3.msra.mxu1 %v805_v39 }
 0x19a   : > { %v599_v8 = vadd.f32 %v598_v7, %v596_v5  ;;  %1224 = vmatprep.subr.mxu1 %v804_v40 }
 0x19b   : > { %1225 = vmatpush3.msra.mxu1 %v804_v40 }
 0x19c   : > { %v600_v9 = vadd.f32 %v599_v8, %v597_v6  ;;  %1226 = vmatprep.subr.mxu1 %v803_v41 }
 0x19d   : > { %1227 = vmatpush3.msra.mxu1 %v803_v41 }
 0x19e   : > { %v601_v10 = vrot.slane %v600_v9, 4  ;;  %1228 = vmatprep.subr.mxu1 %v802_v42 }
 0x19f   : > { %1229 = vmatpush3.msra.mxu1 %v802_v42 }
 0x1a0   : > { %v602_v11 = vadd.f32 %v601_v10, %v600_v9  ;;  %1230 = vmatprep.subr.mxu1 %v801_v43 }
 0x1a1   : > { %1231 = vmatpush3.msra.mxu1 %v801_v43 }
 0x1a2   : > { %v603_v12 = vrot.slane %v602_v11, 2  ;;  %1232 = vmatprep.subr.mxu1 %v800_v44 }
 0x1a3   : > { %1233 = vmatpush3.msra.mxu1 %v800_v44 }
 0x1a4   : > { %v604_v13 = vadd.f32 %v603_v12, %v602_v11  ;;  %1234 = vmatprep.subr.mxu1 %v799_v45 }
 0x1a5   : > { %1235 = vmatpush3.msra.mxu1 %v799_v45 }
 0x1a6   : > { %v605_v14 = vrot.slane %v604_v13, 1  ;;  %1236 = vmatprep.subr.mxu1 %v798_v46 }
 0x1a7   : > { %1237 = vmatpush3.msra.mxu1 %v798_v46 }
 0x1a8   : > { %v606_v15 = vadd.f32 %v605_v14, %v604_v13  ;;  %1238 = vmatprep.subr.mxu1 %v797_v47 }
 0x1a9   : > { %1239 = vmatpush3.msra.mxu1 %v797_v47 }
 0x1aa   : > { %v607_v16 = vmul.f32 0.03125, %v606_v15  ;;  %1240 = vmatprep.subr.mxu1 %v796_v48 }
 0x1ab   : > { %1241 = vmatpush3.msra.mxu1 %v796_v48 }
 0x1ac   : > { %v608_v17 = vadd.f32 1e-05, %v607_v16  ;;  %1242 = vmatprep.subr.mxu1 %v795_v49 }
 0x1ad   : > { %1243 = vmatpush3.msra.mxu1 %v795_v49 }
 0x1ae   : > { %1378 = vrsqrt.f32 %v608_v17  ;;  %1244 = vmatprep.subr.mxu1 %v794_v50 }
 0x1af   : > { %1245 = vmatpush3.msra.mxu1 %v794_v50 }
 0x1b0   : > { %1246 = vmatprep.subr.mxu1 %v793_v51 }
 0x1b1   : > { %1247 = vmatpush3.msra.mxu1 %v793_v51 }
 0x1b2   : > { %1248 = vmatprep.subr.mxu1 %v792_v52 }
 0x1b3   : > { %1249 = vmatpush3.msra.mxu1 %v792_v52 }
 0x1b4   : > { %1250 = vmatprep.subr.mxu1 %v791_v53 }
 0x1b5   : > { %1251 = vmatpush3.msra.mxu1 %v791_v53 }
 0x1bb   : > { %v1379_v22 = vpop.eup %1378 }
 0x1bc   : > { %v611_v23 = vmul.f32 %v1379_v22, %v610_v20 }
 0x1be   : > { %v615_v24 = vrot.slane %v611_v23, %v1886_v21 }
 0x1c0   : > { %v616_v26 = vmul.f32 %v615_v24, %v590_v62  ;;  %v617_v27 = vmul.f32 %v615_v24, %v591_v63  ;;  %v618_v28 = vmul.f32 %v615_v24, %v592_v0  ;;  %v619_v29 = vmul.f32 %v615_v24, %v593_v1  ;;  %v766_v24 = vld [vmem:[%s1933_s5] sm:$0x1] }
 0x1c2   : > { %v627_v30 = vadd.f32 %v1076_v25, %v616_v26  ;;  %v628_v31 = vadd.f32 %v1076_v25, %v617_v27  ;;  %v629_v32 = vadd.f32 %v1076_v25, %v618_v28  ;;  %v630_v33 = vadd.f32 %v1076_v25, %v619_v29  ;;  %v1077_v28 = vld [vmem:[%s1934_s6] ss:$0 sm:$0xff] }
 0x1c4   : > { %v631_v34 = vmax.f32 %v627_v30, 0.0  ;;  %v632_v35 = vmax.f32 %v628_v31, 0.0  ;;  %v633_v36 = vmax.f32 %v629_v32, 0.0  ;;  %v634_v37 = vmax.f32 %v630_v33, 0.0 }
 0x1c6   : > { %1214 = vmatprep.mubr.f32.mxu0 %v631_v34 }
 0x1c7   : > { %1215 = vmatmul.mubr.f32.vlgmr.msra.gmra.mxu0 %v632_v35 }
 0x1c8   : > { %1217 = vmatprep.mubr.f32.mxu0 %v633_v36 }
 0x1cb   : > { %1218 = vmatmul.mubr.f32.gmra.mxu0 %v634_v37 }
 0x287   : > { %v1216_v54 = vpop.f32.mrf.mxu0 }
 0x289   : > { %v717_v55 = vpop.f32.mrf.mxu0 }
 0x28a   : > { %v736_v57 = vadd.f32 %v1216_v54, %v717_v55 }
 0x28b   : > { %v1219_v56 = vpop.f32.mrf.mxu0 }
 0x28d   : > { %v727_v58 = vpop.f32.mrf.mxu0 }
 0x28e   : > { %v737_v59 = vadd.f32 %v736_v57, %v727_v58 }
 0x290   : > { %v738_v60 = vadd.f32 %v1219_v56, %v737_v59 }
 0x292   : > { %v739_v61 = vrot.slane %v738_v60, 4 }
 0x294   : > { %v740_v62 = vadd.f32 %v739_v61, %v738_v60 }
 0x296   : > { %v741_v63 = vrot.slane %v740_v62, 2 }
 0x298   : > { %v742_v0 = vadd.f32 %v741_v63, %v740_v62 }
 0x29a   : > { %v743_v1 = vrot.slane %v742_v0, 1 }
 0x29c   : > { %v744_v2 = vadd.f32 %v743_v1, %v742_v0 }
 0x29e   : > { %v745_v3 = vmul.f32 0.03125, %v744_v2 }
 0x2a0   : > { %v746_v4 = vsub.f32 %v717_v55, %v745_v3  ;;  %v747_v5 = vsub.f32 %v1216_v54, %v745_v3  ;;  %v748_v6 = vsub.f32 %v727_v58, %v745_v3  ;;  %v749_v7 = vsub.f32 %v1219_v56, %v745_v3 }
 0x2a2   : > { %v750_v8 = vmul.f32 %v746_v4, %v746_v4  ;;  %v751_v9 = vmul.f32 %v747_v5, %v747_v5  ;;  %v752_v10 = vmul.f32 %v748_v6, %v748_v6  ;;  %v753_v12 = vmul.f32 %v749_v7, %v749_v7 }
 0x2a4   : > { %v754_v11 = vadd.f32 %v751_v9, %v750_v8 }
 0x2a6   : > { %v755_v13 = vadd.f32 %v754_v11, %v752_v10  ;;  %v922_v10 = vld [vmem:[%s1936_s8] sm:$0x1] }
 0x2a8   : > { %v756_v14 = vadd.f32 %v755_v13, %v753_v12 }
 0x2aa   : > { %v757_v15 = vrot.slane %v756_v14, 4 }
 0x2ac   : > { %v758_v16 = vadd.f32 %v757_v15, %v756_v14  ;;  %v1078_v14 = vld [vmem:[%s1937_s9] ss:$0 sm:$0xff] }
 0x2ae   : > { %v759_v17 = vrot.slane %v758_v16, 2 }
 0x2b0   : > { %v760_v18 = vadd.f32 %v759_v17, %v758_v16 }
 0x2b2   : > { %v761_v19 = vrot.slane %v760_v18, 1 }
 0x2b4   : > { %v762_v20 = vadd.f32 %v761_v19, %v760_v18 }
 0x2b6   : > { %v763_v22 = vmul.f32 0.03125, %v762_v20 }
 0x2b8   : > { %v764_v23 = vadd.f32 1e-05, %v763_v22 }
 0x2ba   : > { %1380 = vrsqrt.f32 %v764_v23 }
 0x2c7   : > { %v1381_v25 = vpop.eup %1380 }
 0x2c8   : > { %v767_v26 = vmul.f32 %v1381_v25, %v766_v24 }
 0x2ca   : > { %v771_v27 = vrot.slane %v767_v26, %v1886_v21 }
 0x2cc   : > { %v774_v29 = vmul.f32 %v771_v27, %v748_v6  ;;  %v772_v30 = vmul.f32 %v771_v27, %v746_v4  ;;  %v773_v31 = vmul.f32 %v771_v27, %v747_v5  ;;  %v775_v32 = vmul.f32 %v771_v27, %v749_v7 }
 0x2ce   : > { %v783_v33 = vadd.f32 %v1077_v28, %v772_v30  ;;  %v784_v34 = vadd.f32 %v1077_v28, %v773_v31  ;;  %v785_v35 = vadd.f32 %v1077_v28, %v774_v29  ;;  %v786_v38 = vadd.f32 %v1077_v28, %v775_v32 }
 0x2d0   : > { %v787_v36 = vmax.f32 %v783_v33, 0.0  ;;  %v788_v37 = vmax.f32 %v784_v34, 0.0  ;;  %v789_v39 = vmax.f32 %v785_v35, 0.0  ;;  %v790_v40 = vmax.f32 %v786_v38, 0.0 }
 0x2d2   : > { %1252 = vmatprep.mubr.f32.mxu1 %v787_v36 }
 0x2d3   : > { %1253 = vmatmul.mubr.f32.vlgmr.msra.gmra.mxu1 %v788_v37 }
 0x2d4   : > { %1255 = vmatprep.mubr.f32.mxu1 %v789_v39 }
 0x2d7   : > { %1256 = vmatmul.mubr.f32.gmra.mxu1 %v790_v40 }
 0x393   : > { %v1254_v41 = vpop.f32.mrf.mxu1 }
 0x395   : > { %v873_v42 = vpop.f32.mrf.mxu1 }
 0x396   : > { %v892_v44 = vadd.f32 %v1254_v41, %v873_v42 }
 0x397   : > { %v1257_v43 = vpop.f32.mrf.mxu1 }
 0x399   : > { %v883_v45 = vpop.f32.mrf.mxu1 }
 0x39a   : > { %v893_v46 = vadd.f32 %v892_v44, %v883_v45 }
 0x39c   : > { %v894_v47 = vadd.f32 %v1257_v43, %v893_v46 }
 0x39e   : > { %v895_v48 = vrot.slane %v894_v47, 4 }
 0x3a0   : > { %v896_v49 = vadd.f32 %v895_v48, %v894_v47 }
 0x3a2   : > { %v897_v50 = vrot.slane %v896_v49, 2 }
 0x3a4   : > { %v898_v51 = vadd.f32 %v897_v50, %v896_v49 }
 0x3a6   : > { %v899_v52 = vrot.slane %v898_v51, 1 }
 0x3a8   : > { %v900_v53 = vadd.f32 %v899_v52, %v898_v51 }
 0x3aa   : > { %v901_v54 = vmul.f32 0.03125, %v900_v53 }
 0x3ac   : > { %v902_v55 = vsub.f32 %v873_v42, %v901_v54  ;;  %v903_v56 = vsub.f32 %v1254_v41, %v901_v54  ;;  %v904_v57 = vsub.f32 %v883_v45, %v901_v54  ;;  %v905_v58 = vsub.f32 %v1257_v43, %v901_v54 }
 0x3ae   : > { %v906_v59 = vmul.f32 %v902_v55, %v902_v55  ;;  %v907_v60 = vmul.f32 %v903_v56, %v903_v56  ;;  %v908_v61 = vmul.f32 %v904_v57, %v904_v57  ;;  %v909_v63 = vmul.f32 %v905_v58, %v905_v58 }
 0x3b0   : > { %v910_v62 = vadd.f32 %v907_v60, %v906_v59 }
 0x3b2   : > { %v911_v0 = vadd.f32 %v910_v62, %v908_v61 }
 0x3b4   : > { %v912_v1 = vadd.f32 %v911_v0, %v909_v63 }
 0x3b6   : > { %v913_v2 = vrot.slane %v912_v1, 4 }
 0x3b8   : > { %v914_v3 = vadd.f32 %v913_v2, %v912_v1 }
 0x3ba   : > { %v915_v4 = vrot.slane %v914_v3, 2 }
 0x3bc   : > { %v916_v5 = vadd.f32 %v915_v4, %v914_v3 }
 0x3be   : > { %v917_v6 = vrot.slane %v916_v5, 1 }
 0x3c0   : > { %v918_v7 = vadd.f32 %v917_v6, %v916_v5 }
 0x3c2   : > { %v919_v8 = vmul.f32 0.03125, %v918_v7 }
 0x3c4   : > { %v920_v9 = vadd.f32 1e-05, %v919_v8 }
 0x3c6   : > { %1382 = vrsqrt.f32 %v920_v9 }
 0x3d3   : > { %v1383_v11 = vpop.eup %1382 }
 0x3d4   : > { %v923_v12 = vmul.f32 %v1383_v11, %v922_v10 }
 0x3d6   : > { %v927_v13 = vrot.slane %v923_v12, %v1886_v21 }
 0x3d8   : > { %v928_v15 = vmul.f32 %v927_v13, %v902_v55  ;;  %v929_v16 = vmul.f32 %v927_v13, %v903_v56  ;;  %v930_v17 = vmul.f32 %v927_v13, %v904_v57  ;;  %v931_v18 = vmul.f32 %v927_v13, %v905_v58 }
 0x3da   : > { %v939_v19 = vadd.f32 %v1078_v14, %v928_v15  ;;  %v940_v20 = vadd.f32 %v1078_v14, %v929_v16  ;;  %v941_v22 = vadd.f32 %v1078_v14, %v930_v17  ;;  %v942_v23 = vadd.f32 %v1078_v14, %v931_v18 }
 0x3dc   : > { %943 = vst [vmem:[#allocation12] sm:$0xff] %v939_v19  ;;  %944 = vst [vmem:[#allocation12 + $0x8] sm:$0xff] %v940_v20 }
 0x3dd   : > { %945 = vst [vmem:[#allocation12 + $0x10] sm:$0xff] %v941_v22  ;;  %946 = vst [vmem:[#allocation12 + $0x18] sm:$0xff] %v942_v23 }
 0x3de PF: > { %p1334_p6 = scmp.eq.s32.totalorder %s1680_s17, 1  ;;  %s1603_s26 = smov [#allocation12]  }
 0x3df   : > { %s953_s28 = sshll.u32 %s1603_s26, 4  ;;  %s954_s28 = int_to_ptr.vmem [resolvable:$true] %s953_s28 }
 0x3e0   : > { %s1518_s12 = scalar_lea.vmem %s954_s28, 512  ;;  %p1525_p12 = scmp.lt.s32.totalorder %s954_s28, %s954_s28 }
 0x3e1   : > { %p1519_p7 = scmp.ne.s32.totalorder %s954_s28, %s1518_s12  ;;  %p1526_p2 = scmp.lt.s32.totalorder %s1518_s12, %s1518_s12 }
 0x3e3   : > { %p1520_p1 = pnand %p1519_p7, %p1334_p6  ;;  %p1527_p4 = por %p1526_p2, %p1525_p12 }
 0x3e5   : > { %p1521_p13 = pneg %p1520_p1 }
 0x3e7   : > { %p1528_p3 = pnand %p1527_p4, %p1521_p13 }
 0x3e9   : > { %1531 = shalt.err (!%p1528_p3)
}
 0x3ea   : > { %s1604_s15 = smov 128   ;;  %s1605_s19 = smov 8  }
 0x3eb   : > { %1307 = dma.vmem_to_hbm [thread:$0]  (%p1334_p6), %s954_s28, 512, %s1938_s10, [#allocation5], %s1604_s15, %s1604_s15, %s1605_s19  }
 0x3ec   : > { %1575 = dma.done.wait (%p1334_p6), [#allocation5], 512  }
 0x3ed   : > { %1577 = vsyncadd (%p1334_p6), [#allocation5], 4294966784 }
 0x3ee PF: > { %s1967_s30 = sld [smem:[#allocation18_spill]]  ;;  %p25_p11 = scmp.ge.s32.totalorder %s1683_s18, 4  }
 0x3ef   : > { %s1968_s15 = sld [smem:[#allocation19_spill]]  ;;  %s1969_s13 = smov %s1584_s14 }
 0x3f0   : > { %s1971_s16 = smov %s1683_s18  ;;  %27 = sbr.rel (!%p25_p11) target bundleno = 12 (0xc), region = 130 }
 0x3f4   : > { %s1970_s14 = smov %s1967_s30 }
 0x3f5   :  { %969 = vsyncpa [#allocation4], 1 }
 0x3f6   :  { %971 = vsyncpa [#allocation4 + $0x1], 1 }
 0x3f7   :  { %972 = vsyncpa [#allocation7], 1 }
 0x3f8   :  { %974 = vsyncpa [#allocation7 + $0x1], 1 }
 0x3f9   :  { %975 = vsyncpa [#allocation10], 1 }
 0x3fa   :  { %976 = vsyncpa [#allocation5], 1 }
 0x3fb   :  { %978 = vsyncpa [#allocation5 + $0x1], 1 }

</bundles_post_ra>
